<compile_context>
chip_gen: v7x
topology: tpu7x:2x2x1
jax: 0.10.0
libtpu: 0.0.40
codegen_flags: <defaults>
</compile_context>

<pallas_src>
import functools

import jax
import jax.numpy as jnp
from jax import lax
from jax.experimental import pallas as pl
from jax.experimental.pallas import tpu as pltpu


def _round_up(x, m):
    return (x + m - 1) // m * m


def _lstm_chunk_kernel(gx_ref, wh_ref, out_ref, h_scr, c_scr, *,
                       hidden_pad, time_chunk):
    """Processes `time_chunk` timesteps of the LSTM recurrence per grid step.

    gx_ref : (Tc, Bp, 4*Hp)  precomputed x@Wx + b (bias folded in); i/f/o gate
                             columns pre-scaled by 0.5 for the tanh-sigmoid.
    wh_ref : (Hp, 4*Hp)      hidden->gate weights, same packing/scaling.
    out_ref: (Tc, Bp, Hp)    hidden states for this chunk (time-major).
    h_scr, c_scr: (Bp, Hp)   recurrent state carried across grid steps.
    """
    Hp = hidden_pad

    @pl.when(pl.program_id(0) == 0)
    def _():
        h_scr[...] = jnp.zeros_like(h_scr)
        c_scr[...] = jnp.zeros_like(c_scr)

    def step(j, carry):
        h_prev = h_scr[...]              # (Bp, Hp)
        c_prev = c_scr[...]              # (Bp, Hp)
        # Only the recurrent matmul lives in the serial loop; the input
        # projection was hoisted into one big matmul outside the kernel.
        gates = gx_ref[j] + jnp.dot(
            h_prev.astype(wh_ref.dtype), wh_ref[...],
            preferred_element_type=jnp.float32)          # (Bp, 4Hp)
        # sigmoid(z) == 0.5*tanh(0.5*z) + 0.5; the 0.5 pre-scale is folded
        # into the i/f/o weight/bias columns -> one EUP tanh per sigmoid.
        i = 0.5 * jnp.tanh(gates[:, 0 * Hp:1 * Hp]) + 0.5
        f = 0.5 * jnp.tanh(gates[:, 1 * Hp:2 * Hp]) + 0.5
        g = jnp.tanh(gates[:, 2 * Hp:3 * Hp])
        o = 0.5 * jnp.tanh(gates[:, 3 * Hp:4 * Hp]) + 0.5
        c_new = f * c_prev + i * g
        h_new = o * jnp.tanh(c_new)
        c_scr[...] = c_new
        h_scr[...] = h_new
        out_ref[j] = h_new.astype(out_ref.dtype)
        return carry

    lax.fori_loop(0, time_chunk, step, 0, unroll=True)


def message_lstm_forward(x, wx, wh, b, hidden_size, *, time_chunk=4,
                         weight_dtype=jnp.float32):
    """x: (B, T, I) float32 -> (B, T, H) float32 (r=None forward path)."""
    B, T, I = x.shape
    H = hidden_size
    Hp = _round_up(H, 128)            # lane-aligned per-gate blocks
    Bp = _round_up(B, 8)              # sublane-aligned batch
    Tc = max(1, min(time_chunk, T))
    Tp = _round_up(T, Tc)

    # --- Repack weights: each gate in its own Hp lane block; 0.5 pre-scale on
    #     the sigmoid (i/f/o) gates; zero-pad H->Hp (pad lanes stay exactly 0
    #     through the recurrence). Gate order [i, f, g, o]. ---
    def pack_cols(w):
        rows = w.shape[0]
        out = jnp.zeros((rows, 4 * Hp), jnp.float32)
        for g in range(4):
            s = 1.0 if g == 2 else 0.5          # cell (tanh) gate unscaled
            out = out.at[:, g * Hp:g * Hp + H].set(s * w[:, g * H:(g + 1) * H])
        return out

    wx_p = pack_cols(wx)                                            # (I, 4Hp)
    b_p = pack_cols(b)                                              # (1, 4Hp)
    wh_p = jnp.zeros((Hp, 4 * Hp), jnp.float32).at[:H].set(pack_cols(wh))
    wh_p = wh_p.astype(weight_dtype)                                # (Hp, 4Hp)

    # --- Hoisted input projection: one large matmul with full MXU row
    #     occupancy, emitted directly time-major (bias folded in). ---
    x_p = jnp.pad(x, ((0, Bp - B), (0, 0), (0, 0)))                 # (Bp, T, I)
    gx = jnp.einsum('bti,ig->tbg',
                    x_p.astype(weight_dtype), wx_p.astype(weight_dtype),
                    preferred_element_type=jnp.float32) + b_p        # (T, Bp, 4Hp)
    gx = jnp.pad(gx, ((0, Tp - T), (0, 0), (0, 0)))                  # (Tp, Bp, 4Hp)

    kernel = functools.partial(_lstm_chunk_kernel, hidden_pad=Hp,
                               time_chunk=Tc)
    out_tm = pl.pallas_call(
        kernel,
        out_shape=jax.ShapeDtypeStruct((Tp, Bp, Hp), x.dtype),
        grid_spec=pltpu.PrefetchScalarGridSpec(
            num_scalar_prefetch=0,
            grid=(Tp // Tc,),
            in_specs=[
                pl.BlockSpec((Tc, Bp, 4 * Hp), lambda c: (c, 0, 0)),
                # Constant block index -> fetched once, resident across steps.
                # (For very large H on v7x, single-buffer / bf16 / tile 4H.)
                pl.BlockSpec((Hp, 4 * Hp), lambda c: (0, 0)),
            ],
            out_specs=pl.BlockSpec((Tc, Bp, Hp), lambda c: (c, 0, 0)),
            scratch_shapes=[
                pltpu.VMEM((Bp, Hp), jnp.float32),   # h state
                pltpu.VMEM((Bp, Hp), jnp.float32),   # c state
            ],
        ),
        # Recurrence is carried through VMEM scratch -> the time-chunk axis
        # must execute serially on one TensorCore.
        compiler_params=pltpu.CompilerParams(
            dimension_semantics=("arbitrary",)),
    )(gx, wh_p)

    return jnp.transpose(out_tm[:T, :B, :H], (1, 0, 2))


def reference_forward(x, wx, wh, b, hidden_size):
    """Pure-JAX reference identical to the PyTorch forward (r=None path)."""
    B, T, _ = x.shape
    H = hidden_size
    h = jnp.zeros((B, H), jnp.float32)
    c = jnp.zeros((B, H), jnp.float32)
    outs = []
    for t in range(T):
        gates = x[:, t, :] @ wx + h @ wh + b
        i = jax.nn.sigmoid(gates[:, 0 * H:1 * H])
        f = jax.nn.sigmoid(gates[:, 1 * H:2 * H])
        g = jnp.tanh(gates[:, 2 * H:3 * H])
        o = jax.nn.sigmoid(gates[:, 3 * H:4 * H])
        c = f * c + i * g
        h = o * jnp.tanh(c)
        outs.append(h)
    return jnp.stack(outs, axis=1)


def init_params(key, input_size, hidden_size):
    """Deterministic synthetic weights, PyTorch-Linear shapes then fused.

    Each gate has Wix: (H, I), Whx: (H, H), b_ih: (H,), b_hh: (H,)
    (PyTorch nn.Linear stores (out, in); y = x @ W.T + b).
    Fused into wx: (I, 4H), wh: (H, 4H), b: (1, 4H), gate order [i, f, g, o].
    """
    I, H = input_size, hidden_size
    keys = jax.random.split(key, 16)
    scale_i = 1.0 / jnp.sqrt(I)
    scale_h = 1.0 / jnp.sqrt(H)

    def lin(k, out_f, in_f, scale):
        return jax.random.uniform(k, (out_f, in_f), jnp.float32, -scale, scale)

    def bias(k, out_f, scale):
        return jax.random.uniform(k, (out_f,), jnp.float32, -scale, scale)

    # gate order: i, f, g, o
    w_ix = [lin(keys[g], H, I, scale_i) for g in range(4)]        # Wii,Wif,Wig,Wio
    w_hx = [lin(keys[4 + g], H, H, scale_h) for g in range(4)]    # Whi,Whf,Whg,Who
    b_ix = [bias(keys[8 + g], H, scale_i) for g in range(4)]
    b_hx = [bias(keys[12 + g], H, scale_h) for g in range(4)]

    wx = jnp.concatenate([w.T for w in w_ix], axis=1)             # (I, 4H)
    wh = jnp.concatenate([w.T for w in w_hx], axis=1)             # (H, 4H)
    b = jnp.concatenate([bi + bh for bi, bh in zip(b_ix, b_hx)])[None, :]
    return wx, wh, b


if __name__ == "__main__":
    B, T, I, H = 2, 8, 4, 32
    key = jax.random.PRNGKey(0)
    k_x, k_w = jax.random.split(key)
    x = jax.random.normal(k_x, (B, T, I), jnp.float32)
    wx, wh, b = init_params(k_w, I, H)

    out = message_lstm_forward(x, wx, wh, b, H, time_chunk=4)
    out = jax.block_until_ready(out)

    ref = reference_forward(x, wx, wh, b, H)
    assert out.shape == (B, T, H)
    err = jnp.max(jnp.abs(out - ref))
    assert jnp.allclose(out, ref, atol=1e-4, rtol=1e-4), f"max abs err = {err}"
    print("KERNEL_OK")
</pallas_src>

<mosaic_0001>
module attributes {stable_mosaic.version = 11 : i64} {
  func.func @_lstm_chunk_kernel(%arg0: i32, %arg1: memref<4x8x512xf32, #tpu.memory_space<vmem>>, %arg2: memref<128x512xf32, #tpu.memory_space<vmem>>, %arg3: memref<4x8x128xf32, #tpu.memory_space<vmem>>, %arg4: memref<8x128xf32, #tpu.memory_space<vmem>>, %arg5: memref<8x128xf32, #tpu.memory_space<vmem>>) attributes {dimension_semantics = [#tpu.dimension_semantics<arbitrary>], iteration_bounds = array<i64: 2>, scalar_prefetch = 0 : i64, scratch_operands = 2 : i64, tpu.core_type = #tpu.core_type<tc>, window_params = [{transform_indices = @transform_0, window_bounds = array<i64: 4, 8, 512>}, {pipeline_mode = #tpu.pipeline_mode<synchronous>, transform_indices = @transform_1, window_bounds = array<i64: 128, 512>}, {transform_indices = @transform_2, window_bounds = array<i64: 4, 8, 128>}]} {
    %c0_i32 = arith.constant 0 : i32
    %0 = arith.cmpi eq, %arg0, %c0_i32 : i32
    %1 = arith.extui %0 : i1 to i32
    %c0_i32_0 = arith.constant 0 : i32
    %2 = arith.cmpi ne, %1, %c0_i32_0 : i32
    scf.if %2 {
      %cst_84 = arith.constant 0.000000e+00 : f32
      %159 = vector.broadcast %cst_84 : f32 to vector<8x128xf32>
      %c0_85 = arith.constant 0 : index
      %c0_86 = arith.constant 0 : index
      %160 = vector.load %arg4[%c0_85, %c0_86] : memref<8x128xf32, #tpu.memory_space<vmem>>, vector<8x128xf32>
      tpu.vector_store %arg4[%c0_85, %c0_86], %159 {strides = array<i32>} : memref<8x128xf32, #tpu.memory_space<vmem>>, vector<8x128xf32>,
      %cst_87 = arith.constant 0.000000e+00 : f32
      %161 = vector.broadcast %cst_87 : f32 to vector<8x128xf32>
      %c0_88 = arith.constant 0 : index
      %c0_89 = arith.constant 0 : index
      %162 = vector.load %arg5[%c0_88, %c0_89] : memref<8x128xf32, #tpu.memory_space<vmem>>, vector<8x128xf32>
      tpu.vector_store %arg5[%c0_88, %c0_89], %161 {strides = array<i32>} : memref<8x128xf32, #tpu.memory_space<vmem>>, vector<8x128xf32>,
    } else {
    }
    %c0_i32_1 = arith.constant 0 : i32
    %c0 = arith.constant 0 : index
    %c0_2 = arith.constant 0 : index
    %3 = vector.load %arg4[%c0, %c0_2] : memref<8x128xf32, #tpu.memory_space<vmem>>, vector<8x128xf32>
    %c0_3 = arith.constant 0 : index
    %c0_4 = arith.constant 0 : index
    %4 = vector.load %arg5[%c0_3, %c0_4] : memref<8x128xf32, #tpu.memory_space<vmem>>, vector<8x128xf32>
    %5 = arith.index_cast %c0_i32_1 : i32 to index
    %c0_5 = arith.constant 0 : index
    %c0_6 = arith.constant 0 : index
    %6 = vector.load %arg1[%5, %c0_5, %c0_6] : memref<4x8x512xf32, #tpu.memory_space<vmem>>, vector<1x8x512xf32>
    %7 = vector.shape_cast %6 : vector<1x8x512xf32> to vector<8x512xf32>
    %c0_7 = arith.constant 0 : index
    %c0_8 = arith.constant 0 : index
    %8 = vector.load %arg2[%c0_7, %c0_8] : memref<128x512xf32, #tpu.memory_space<vmem>>, vector<128x512xf32>
    %cst = arith.constant dense<0.000000e+00> : vector<8x512xf32>
    %9 = tpu.matmul %3, %8, %cst {dimension_numbers = #tpu.dot_dimension_numbers<[1], [0], [0], [1], [0, 0, 1, 1], [], []>} : vector<8x128xf32>, vector<128x512xf32>, vector<8x512xf32> -> vector<8x512xf32>
    %10 = arith.addf %7, %9 : vector<8x512xf32>
    %11 = vector.extract_strided_slice %10 {offsets = [0, 0], sizes = [8, 128], strides = [1, 1]} : vector<8x512xf32> to vector<8x128xf32>
    %12 = math.tanh %11 : vector<8x128xf32>
    %cst_9 = arith.constant 5.000000e-01 : f32
    %13 = vector.broadcast %cst_9 : f32 to vector<8x128xf32>
    %14 = arith.mulf %13, %12 : vector<8x128xf32>
    %cst_10 = arith.constant 5.000000e-01 : f32
    %15 = vector.broadcast %cst_10 : f32 to vector<8x128xf32>
    %16 = arith.addf %14, %15 : vector<8x128xf32>
    %17 = vector.extract_strided_slice %10 {offsets = [0, 128], sizes = [8, 128], strides = [1, 1]} : vector<8x512xf32> to vector<8x128xf32>
    %18 = math.tanh %17 : vector<8x128xf32>
    %cst_11 = arith.constant 5.000000e-01 : f32
    %19 = vector.broadcast %cst_11 : f32 to vector<8x128xf32>
    %20 = arith.mulf %19, %18 : vector<8x128xf32>
    %cst_12 = arith.constant 5.000000e-01 : f32
    %21 = vector.broadcast %cst_12 : f32 to vector<8x128xf32>
    %22 = arith.addf %20, %21 : vector<8x128xf32>
    %23 = vector.extract_strided_slice %10 {offsets = [0, 256], sizes = [8, 128], strides = [1, 1]} : vector<8x512xf32> to vector<8x128xf32>
    %24 = math.tanh %23 : vector<8x128xf32>
    %25 = vector.extract_strided_slice %10 {offsets = [0, 384], sizes = [8, 128], strides = [1, 1]} : vector<8x512xf32> to vector<8x128xf32>
    %26 = math.tanh %25 : vector<8x128xf32>
    %cst_13 = arith.constant 5.000000e-01 : f32
    %27 = vector.broadcast %cst_13 : f32 to vector<8x128xf32>
    %28 = arith.mulf %27, %26 : vector<8x128xf32>
    %cst_14 = arith.constant 5.000000e-01 : f32
    %29 = vector.broadcast %cst_14 : f32 to vector<8x128xf32>
    %30 = arith.addf %28, %29 : vector<8x128xf32>
    %31 = arith.mulf %22, %4 : vector<8x128xf32>
    %32 = arith.mulf %16, %24 : vector<8x128xf32>
    %33 = arith.addf %31, %32 : vector<8x128xf32>
    %34 = math.tanh %33 : vector<8x128xf32>
    %35 = arith.mulf %30, %34 : vector<8x128xf32>
    %c0_15 = arith.constant 0 : index
    %c0_16 = arith.constant 0 : index
    %36 = vector.load %arg5[%c0_15, %c0_16] : memref<8x128xf32, #tpu.memory_space<vmem>>, vector<8x128xf32>
    tpu.vector_store %arg5[%c0_15, %c0_16], %33 {strides = array<i32>} : memref<8x128xf32, #tpu.memory_space<vmem>>, vector<8x128xf32>,
    %c0_17 = arith.constant 0 : index
    %c0_18 = arith.constant 0 : index
    %37 = vector.load %arg4[%c0_17, %c0_18] : memref<8x128xf32, #tpu.memory_space<vmem>>, vector<8x128xf32>
    tpu.vector_store %arg4[%c0_17, %c0_18], %35 {strides = array<i32>} : memref<8x128xf32, #tpu.memory_space<vmem>>, vector<8x128xf32>,
    %38 = arith.index_cast %c0_i32_1 : i32 to index
    %c0_19 = arith.constant 0 : index
    %c0_20 = arith.constant 0 : index
    %39 = vector.load %arg3[%38, %c0_19, %c0_20] : memref<4x8x128xf32, #tpu.memory_space<vmem>>, vector<1x8x128xf32>
    %40 = vector.shape_cast %39 : vector<1x8x128xf32> to vector<8x128xf32>
    %41 = vector.shape_cast %35 : vector<8x128xf32> to vector<1x8x128xf32>
    tpu.vector_store %arg3[%38, %c0_19, %c0_20], %41 {strides = array<i32>} : memref<4x8x128xf32, #tpu.memory_space<vmem>>, vector<1x8x128xf32>,
    %c1_i32 = arith.constant 1 : i32
    %c0_21 = arith.constant 0 : index
    %c0_22 = arith.constant 0 : index
    %42 = vector.load %arg4[%c0_21, %c0_22] : memref<8x128xf32, #tpu.memory_space<vmem>>, vector<8x128xf32>
    %c0_23 = arith.constant 0 : index
    %c0_24 = arith.constant 0 : index
    %43 = vector.load %arg5[%c0_23, %c0_24] : memref<8x128xf32, #tpu.memory_space<vmem>>, vector<8x128xf32>
    %44 = arith.index_cast %c1_i32 : i32 to index
    %c0_25 = arith.constant 0 : index
    %c0_26 = arith.constant 0 : index
    %45 = vector.load %arg1[%44, %c0_25, %c0_26] : memref<4x8x512xf32, #tpu.memory_space<vmem>>, vector<1x8x512xf32>
    %46 = vector.shape_cast %45 : vector<1x8x512xf32> to vector<8x512xf32>
    %c0_27 = arith.constant 0 : index
    %c0_28 = arith.constant 0 : index
    %47 = vector.load %arg2[%c0_27, %c0_28] : memref<128x512xf32, #tpu.memory_space<vmem>>, vector<128x512xf32>
    %cst_29 = arith.constant dense<0.000000e+00> : vector<8x512xf32>
    %48 = tpu.matmul %42, %47, %cst_29 {dimension_numbers = #tpu.dot_dimension_numbers<[1], [0], [0], [1], [0, 0, 1, 1], [], []>} : vector<8x128xf32>, vector<128x512xf32>, vector<8x512xf32> -> vector<8x512xf32>
    %49 = arith.addf %46, %48 : vector<8x512xf32>
    %50 = vector.extract_strided_slice %49 {offsets = [0, 0], sizes = [8, 128], strides = [1, 1]} : vector<8x512xf32> to vector<8x128xf32>
    %51 = math.tanh %50 : vector<8x128xf32>
    %cst_30 = arith.constant 5.000000e-01 : f32
    %52 = vector.broadcast %cst_30 : f32 to vector<8x128xf32>
    %53 = arith.mulf %52, %51 : vector<8x128xf32>
    %cst_31 = arith.constant 5.000000e-01 : f32
    %54 = vector.broadcast %cst_31 : f32 to vector<8x128xf32>
    %55 = arith.addf %53, %54 : vector<8x128xf32>
    %56 = vector.extract_strided_slice %49 {offsets = [0, 128], sizes = [8, 128], strides = [1, 1]} : vector<8x512xf32> to vector<8x128xf32>
    %57 = math.tanh %56 : vector<8x128xf32>
    %cst_32 = arith.constant 5.000000e-01 : f32
    %58 = vector.broadcast %cst_32 : f32 to vector<8x128xf32>
    %59 = arith.mulf %58, %57 : vector<8x128xf32>
    %cst_33 = arith.constant 5.000000e-01 : f32
    %60 = vector.broadcast %cst_33 : f32 to vector<8x128xf32>
    %61 = arith.addf %59, %60 : vector<8x128xf32>
    %62 = vector.extract_strided_slice %49 {offsets = [0, 256], sizes = [8, 128], strides = [1, 1]} : vector<8x512xf32> to vector<8x128xf32>
    %63 = math.tanh %62 : vector<8x128xf32>
    %64 = vector.extract_strided_slice %49 {offsets = [0, 384], sizes = [8, 128], strides = [1, 1]} : vector<8x512xf32> to vector<8x128xf32>
    %65 = math.tanh %64 : vector<8x128xf32>
    %cst_34 = arith.constant 5.000000e-01 : f32
    %66 = vector.broadcast %cst_34 : f32 to vector<8x128xf32>
    %67 = arith.mulf %66, %65 : vector<8x128xf32>
    %cst_35 = arith.constant 5.000000e-01 : f32
    %68 = vector.broadcast %cst_35 : f32 to vector<8x128xf32>
    %69 = arith.addf %67, %68 : vector<8x128xf32>
    %70 = arith.mulf %61, %43 : vector<8x128xf32>
    %71 = arith.mulf %55, %63 : vector<8x128xf32>
    %72 = arith.addf %70, %71 : vector<8x128xf32>
    %73 = math.tanh %72 : vector<8x128xf32>
    %74 = arith.mulf %69, %73 : vector<8x128xf32>
    %c0_36 = arith.constant 0 : index
    %c0_37 = arith.constant 0 : index
    %75 = vector.load %arg5[%c0_36, %c0_37] : memref<8x128xf32, #tpu.memory_space<vmem>>, vector<8x128xf32>
    tpu.vector_store %arg5[%c0_36, %c0_37], %72 {strides = array<i32>} : memref<8x128xf32, #tpu.memory_space<vmem>>, vector<8x128xf32>,
    %c0_38 = arith.constant 0 : index
    %c0_39 = arith.constant 0 : index
    %76 = vector.load %arg4[%c0_38, %c0_39] : memref<8x128xf32, #tpu.memory_space<vmem>>, vector<8x128xf32>
    tpu.vector_store %arg4[%c0_38, %c0_39], %74 {strides = array<i32>} : memref<8x128xf32, #tpu.memory_space<vmem>>, vector<8x128xf32>,
    %77 = arith.index_cast %c1_i32 : i32 to index
    %c0_40 = arith.constant 0 : index
    %c0_41 = arith.constant 0 : index
    %78 = vector.load %arg3[%77, %c0_40, %c0_41] : memref<4x8x128xf32, #tpu.memory_space<vmem>>, vector<1x8x128xf32>
    %79 = vector.shape_cast %78 : vector<1x8x128xf32> to vector<8x128xf32>
    %80 = vector.shape_cast %74 : vector<8x128xf32> to vector<1x8x128xf32>
    tpu.vector_store %arg3[%77, %c0_40, %c0_41], %80 {strides = array<i32>} : memref<4x8x128xf32, #tpu.memory_space<vmem>>, vector<1x8x128xf32>,
    %c2_i32 = arith.constant 2 : i32
    %c0_42 = arith.constant 0 : index
    %c0_43 = arith.constant 0 : index
    %81 = vector.load %arg4[%c0_42, %c0_43] : memref<8x128xf32, #tpu.memory_space<vmem>>, vector<8x128xf32>
    %c0_44 = arith.constant 0 : index
    %c0_45 = arith.constant 0 : index
    %82 = vector.load %arg5[%c0_44, %c0_45] : memref<8x128xf32, #tpu.memory_space<vmem>>, vector<8x128xf32>
    %83 = arith.index_cast %c2_i32 : i32 to index
    %c0_46 = arith.constant 0 : index
    %c0_47 = arith.constant 0 : index
    %84 = vector.load %arg1[%83, %c0_46, %c0_47] : memref<4x8x512xf32, #tpu.memory_space<vmem>>, vector<1x8x512xf32>
    %85 = vector.shape_cast %84 : vector<1x8x512xf32> to vector<8x512xf32>
    %c0_48 = arith.constant 0 : index
    %c0_49 = arith.constant 0 : index
    %86 = vector.load %arg2[%c0_48, %c0_49] : memref<128x512xf32, #tpu.memory_space<vmem>>, vector<128x512xf32>
    %cst_50 = arith.constant dense<0.000000e+00> : vector<8x512xf32>
    %87 = tpu.matmul %81, %86, %cst_50 {dimension_numbers = #tpu.dot_dimension_numbers<[1], [0], [0], [1], [0, 0, 1, 1], [], []>} : vector<8x128xf32>, vector<128x512xf32>, vector<8x512xf32> -> vector<8x512xf32>
    %88 = arith.addf %85, %87 : vector<8x512xf32>
    %89 = vector.extract_strided_slice %88 {offsets = [0, 0], sizes = [8, 128], strides = [1, 1]} : vector<8x512xf32> to vector<8x128xf32>
    %90 = math.tanh %89 : vector<8x128xf32>
    %cst_51 = arith.constant 5.000000e-01 : f32
    %91 = vector.broadcast %cst_51 : f32 to vector<8x128xf32>
    %92 = arith.mulf %91, %90 : vector<8x128xf32>
    %cst_52 = arith.constant 5.000000e-01 : f32
    %93 = vector.broadcast %cst_52 : f32 to vector<8x128xf32>
    %94 = arith.addf %92, %93 : vector<8x128xf32>
    %95 = vector.extract_strided_slice %88 {offsets = [0, 128], sizes = [8, 128], strides = [1, 1]} : vector<8x512xf32> to vector<8x128xf32>
    %96 = math.tanh %95 : vector<8x128xf32>
    %cst_53 = arith.constant 5.000000e-01 : f32
    %97 = vector.broadcast %cst_53 : f32 to vector<8x128xf32>
    %98 = arith.mulf %97, %96 : vector<8x128xf32>
    %cst_54 = arith.constant 5.000000e-01 : f32
    %99 = vector.broadcast %cst_54 : f32 to vector<8x128xf32>
    %100 = arith.addf %98, %99 : vector<8x128xf32>
    %101 = vector.extract_strided_slice %88 {offsets = [0, 256], sizes = [8, 128], strides = [1, 1]} : vector<8x512xf32> to vector<8x128xf32>
    %102 = math.tanh %101 : vector<8x128xf32>
    %103 = vector.extract_strided_slice %88 {offsets = [0, 384], sizes = [8, 128], strides = [1, 1]} : vector<8x512xf32> to vector<8x128xf32>
    %104 = math.tanh %103 : vector<8x128xf32>
    %cst_55 = arith.constant 5.000000e-01 : f32
    %105 = vector.broadcast %cst_55 : f32 to vector<8x128xf32>
    %106 = arith.mulf %105, %104 : vector<8x128xf32>
    %cst_56 = arith.constant 5.000000e-01 : f32
    %107 = vector.broadcast %cst_56 : f32 to vector<8x128xf32>
    %108 = arith.addf %106, %107 : vector<8x128xf32>
    %109 = arith.mulf %100, %82 : vector<8x128xf32>
    %110 = arith.mulf %94, %102 : vector<8x128xf32>
    %111 = arith.addf %109, %110 : vector<8x128xf32>
    %112 = math.tanh %111 : vector<8x128xf32>
    %113 = arith.mulf %108, %112 : vector<8x128xf32>
    %c0_57 = arith.constant 0 : index
    %c0_58 = arith.constant 0 : index
    %114 = vector.load %arg5[%c0_57, %c0_58] : memref<8x128xf32, #tpu.memory_space<vmem>>, vector<8x128xf32>
    tpu.vector_store %arg5[%c0_57, %c0_58], %111 {strides = array<i32>} : memref<8x128xf32, #tpu.memory_space<vmem>>, vector<8x128xf32>,
    %c0_59 = arith.constant 0 : index
    %c0_60 = arith.constant 0 : index
    %115 = vector.load %arg4[%c0_59, %c0_60] : memref<8x128xf32, #tpu.memory_space<vmem>>, vector<8x128xf32>
    tpu.vector_store %arg4[%c0_59, %c0_60], %113 {strides = array<i32>} : memref<8x128xf32, #tpu.memory_space<vmem>>, vector<8x128xf32>,
    %116 = arith.index_cast %c2_i32 : i32 to index
    %c0_61 = arith.constant 0 : index
    %c0_62 = arith.constant 0 : index
    %117 = vector.load %arg3[%116, %c0_61, %c0_62] : memref<4x8x128xf32, #tpu.memory_space<vmem>>, vector<1x8x128xf32>
    %118 = vector.shape_cast %117 : vector<1x8x128xf32> to vector<8x128xf32>
    %119 = vector.shape_cast %113 : vector<8x128xf32> to vector<1x8x128xf32>
    tpu.vector_store %arg3[%116, %c0_61, %c0_62], %119 {strides = array<i32>} : memref<4x8x128xf32, #tpu.memory_space<vmem>>, vector<1x8x128xf32>,
    %c3_i32 = arith.constant 3 : i32
    %c0_63 = arith.constant 0 : index
    %c0_64 = arith.constant 0 : index
    %120 = vector.load %arg4[%c0_63, %c0_64] : memref<8x128xf32, #tpu.memory_space<vmem>>, vector<8x128xf32>
    %c0_65 = arith.constant 0 : index
    %c0_66 = arith.constant 0 : index
    %121 = vector.load %arg5[%c0_65, %c0_66] : memref<8x128xf32, #tpu.memory_space<vmem>>, vector<8x128xf32>
    %122 = arith.index_cast %c3_i32 : i32 to index
    %c0_67 = arith.constant 0 : index
    %c0_68 = arith.constant 0 : index
    %123 = vector.load %arg1[%122, %c0_67, %c0_68] : memref<4x8x512xf32, #tpu.memory_space<vmem>>, vector<1x8x512xf32>
    %124 = vector.shape_cast %123 : vector<1x8x512xf32> to vector<8x512xf32>
    %c0_69 = arith.constant 0 : index
    %c0_70 = arith.constant 0 : index
    %125 = vector.load %arg2[%c0_69, %c0_70] : memref<128x512xf32, #tpu.memory_space<vmem>>, vector<128x512xf32>
    %cst_71 = arith.constant dense<0.000000e+00> : vector<8x512xf32>
    %126 = tpu.matmul %120, %125, %cst_71 {dimension_numbers = #tpu.dot_dimension_numbers<[1], [0], [0], [1], [0, 0, 1, 1], [], []>} : vector<8x128xf32>, vector<128x512xf32>, vector<8x512xf32> -> vector<8x512xf32>
    %127 = arith.addf %124, %126 : vector<8x512xf32>
    %128 = vector.extract_strided_slice %127 {offsets = [0, 0], sizes = [8, 128], strides = [1, 1]} : vector<8x512xf32> to vector<8x128xf32>
    %129 = math.tanh %128 : vector<8x128xf32>
    %cst_72 = arith.constant 5.000000e-01 : f32
    %130 = vector.broadcast %cst_72 : f32 to vector<8x128xf32>
    %131 = arith.mulf %130, %129 : vector<8x128xf32>
    %cst_73 = arith.constant 5.000000e-01 : f32
    %132 = vector.broadcast %cst_73 : f32 to vector<8x128xf32>
    %133 = arith.addf %131, %132 : vector<8x128xf32>
    %134 = vector.extract_strided_slice %127 {offsets = [0, 128], sizes = [8, 128], strides = [1, 1]} : vector<8x512xf32> to vector<8x128xf32>
    %135 = math.tanh %134 : vector<8x128xf32>
    %cst_74 = arith.constant 5.000000e-01 : f32
    %136 = vector.broadcast %cst_74 : f32 to vector<8x128xf32>
    %137 = arith.mulf %136, %135 : vector<8x128xf32>
    %cst_75 = arith.constant 5.000000e-01 : f32
    %138 = vector.broadcast %cst_75 : f32 to vector<8x128xf32>
    %139 = arith.addf %137, %138 : vector<8x128xf32>
    %140 = vector.extract_strided_slice %127 {offsets = [0, 256], sizes = [8, 128], strides = [1, 1]} : vector<8x512xf32> to vector<8x128xf32>
    %141 = math.tanh %140 : vector<8x128xf32>
    %142 = vector.extract_strided_slice %127 {offsets = [0, 384], sizes = [8, 128], strides = [1, 1]} : vector<8x512xf32> to vector<8x128xf32>
    %143 = math.tanh %142 : vector<8x128xf32>
    %cst_76 = arith.constant 5.000000e-01 : f32
    %144 = vector.broadcast %cst_76 : f32 to vector<8x128xf32>
    %145 = arith.mulf %144, %143 : vector<8x128xf32>
    %cst_77 = arith.constant 5.000000e-01 : f32
    %146 = vector.broadcast %cst_77 : f32 to vector<8x128xf32>
    %147 = arith.addf %145, %146 : vector<8x128xf32>
    %148 = arith.mulf %139, %121 : vector<8x128xf32>
    %149 = arith.mulf %133, %141 : vector<8x128xf32>
    %150 = arith.addf %148, %149 : vector<8x128xf32>
    %151 = math.tanh %150 : vector<8x128xf32>
    %152 = arith.mulf %147, %151 : vector<8x128xf32>
    %c0_78 = arith.constant 0 : index
    %c0_79 = arith.constant 0 : index
    %153 = vector.load %arg5[%c0_78, %c0_79] : memref<8x128xf32, #tpu.memory_space<vmem>>, vector<8x128xf32>
    tpu.vector_store %arg5[%c0_78, %c0_79], %150 {strides = array<i32>} : memref<8x128xf32, #tpu.memory_space<vmem>>, vector<8x128xf32>,
    %c0_80 = arith.constant 0 : index
    %c0_81 = arith.constant 0 : index
    %154 = vector.load %arg4[%c0_80, %c0_81] : memref<8x128xf32, #tpu.memory_space<vmem>>, vector<8x128xf32>
    tpu.vector_store %arg4[%c0_80, %c0_81], %152 {strides = array<i32>} : memref<8x128xf32, #tpu.memory_space<vmem>>, vector<8x128xf32>,
    %155 = arith.index_cast %c3_i32 : i32 to index
    %c0_82 = arith.constant 0 : index
    %c0_83 = arith.constant 0 : index
    %156 = vector.load %arg3[%155, %c0_82, %c0_83] : memref<4x8x128xf32, #tpu.memory_space<vmem>>, vector<1x8x128xf32>
    %157 = vector.shape_cast %156 : vector<1x8x128xf32> to vector<8x128xf32>
    %158 = vector.shape_cast %152 : vector<8x128xf32> to vector<1x8x128xf32>
    tpu.vector_store %arg3[%155, %c0_82, %c0_83], %158 {strides = array<i32>} : memref<4x8x128xf32, #tpu.memory_space<vmem>>, vector<1x8x128xf32>,
    %c4_i32 = arith.constant 4 : i32
    return
  }
  func.func @transform_0(%arg0: i32) -> (i32, i32, i32) {
    %c0_i32 = arith.constant 0 : i32
    %c0_i32_0 = arith.constant 0 : i32
    %c0_i32_1 = arith.constant 0 : i32
    return %arg0, %c0_i32, %c0_i32_0 : i32, i32, i32
  }
  func.func @transform_1(%arg0: i32) -> (i32, i32) {
    %c0_i32 = arith.constant 0 : i32
    %c0_i32_0 = arith.constant 0 : i32
    %c0_i32_1 = arith.constant 0 : i32
    return %c0_i32, %c0_i32_0 : i32, i32
  }
  func.func @transform_2(%arg0: i32) -> (i32, i32, i32) {
    %c0_i32 = arith.constant 0 : i32
    %c0_i32_0 = arith.constant 0 : i32
    %c0_i32_1 = arith.constant 0 : i32
    return %arg0, %c0_i32, %c0_i32_0 : i32, i32, i32
  }
}

</mosaic_0001>

<bundles_post_ra>
// kernel: tpu_custom_call.1
= control target key start
LH: loop header
LB: loop body
LE: loop exit
PB: predicated region body
PF: predicated region fallthrough
CT: control target
= control target key end

     0   :  { %7 = vsyncpa [#allocation5], 0  ;;  %s2218_s0 = inlined_call_operand.hbm [shape: f32[8,8,512], index: 0, kind: input, shape index: {}]   ;;  %s2219_s1 = inlined_call_operand.hbm [shape: f32[128,512], index: 1, kind: input, shape index: {}]   ;;  %s2220_s2 = inlined_call_operand.hbm [shape: f32[8,8,128], index: 2, kind: output, shape index: {}]  }
   0x1   :  { %9 = vsyncpa [#allocation5 + $0x1], 0 }
   0x2   :  { %10 = vsyncpa [#allocation8], 0 }
   0x3   :  { %11 = vsyncpa [#allocation6], 0 }
   0x4   :  { %13 = vsyncpa [#allocation6 + $0x1], 0  ;;  %s1774_s9 = smov 0   ;;  %s1776_s10 = smov 0  }
   0x5   :  { %s1778_s11 = smov 0   ;;  %s1780_s12 = smov 0  }
   0x6 LB: > { %s1795_s13 = sadd.s32 4294967295, %s1748_s12   ;;  %s1225_s14 = sadd.s32 4294967294, %s1748_s12   ;;  %s1748_s12 = sphi %s1780_s12, %s2241_s12   ;;  %s1744_s11 = sphi %s1778_s11, %s2240_s11   ;;  %s1740_s10 = sphi %s1776_s10, %s2239_s10   ;;  %s1736_s9 = sphi %s1774_s9, %s2238_s9  }
   0x7   : > { %p39_p0 = scmp.ne.s32.totalorder %s1740_s10, %s1736_s9  ;;  %p2221_p1 = scmp.eq.s32.totalorder %s1795_s13, 0 }
   0x8   : > { %p90_p3 = scmp.eq.s32.totalorder %s1225_s14, 1  ;;  %p1226_p5 = scmp.ge.s32.totalorder %s1748_s12, 1 }
   0x9   : > { %p1804_p4 = por %p2221_p1, %p39_p0  ;;  %p97_p7 = scmp.lt.s32.totalorder %s1748_s12, 3 }
   0xa   : > { %p1809_p6 = por %p90_p3, %p39_p0  ;;  %s1750_s18 = smov [#allocation7]  }
   0xb   : > { %s2224_s15 = scalar_select %p1804_p4, 1, 0 }
   0xc   : > { %s2225_s16 = scalar_select %p1809_p6, 1, 0 }
   0xd   : > { %p1815_p9 = pnand %p1226_p5, %p97_p7  ;;  %s109_s19 = sshll.u32 %s1750_s18, 4  ;;  %s1819_s19 = int_to_ptr.vmem [resolvable:$true] %s109_s19 }
   0xe   : > { %s1831_s21 = sadd.s32 1, %s1748_s12   ;;  %s26_s22 = sadd.s32 1, %s1744_s11 }
   0xf   : > { %s2226_s17 = scalar_select %p1815_p9, 1, 0 }
  0x10   : > { %p1525_p10 = pneg %p1815_p9  ;;  %s23_s23 = ssub.s32 %s1748_s12, %s1831_s21 }
  0x11   : > { %s1620_s26 = scalar_lea.hbm %s2219_s1, 8192 }
  0x12   : > { %p1826_p12 = pnand %p1525_p10, %p2221_p1  ;;  %p1621_p13 = scmp.ne.s32.totalorder %s2219_s1, %s1620_s26 }
  0x13   : > { %p1627_p7 = scmp.lt.u32.totalorder %s1620_s26, %s2219_s1 }
  0x14   : > { %p1622_p0 = pneg %p1826_p12 }
  0x16   : > { %p1623_p3 = pnand %p1622_p0, %p1621_p13 }
  0x18   : > { %p1624_p5 = pneg %p1623_p3 }
  0x1a   : > { %p1629_p10 = pnand %p1627_p7, %p1624_p5 }
  0x1c   : > { %1632 = shalt.err (!%p1629_p10)
}
  0x1d   : > { %s1633_s3 = scalar_lea.vmem %s1819_s19, 8192  ;;  %p1641_p2 = scmp.lt.s32.totalorder %s1819_s19, %s1819_s19 }
  0x1e   : > { %p1634_p11 = scmp.ne.s32.totalorder %s1819_s19, %s1633_s3  ;;  %p1642_p6 = scmp.lt.s32.totalorder %s1633_s3, %s1633_s3 }
  0x20   : > { %p1636_p8 = pnand %p1634_p11, %p1622_p0  ;;  %p1643_p4 = por %p1642_p6, %p1641_p2 }
  0x22   : > { %p1637_p1 = pneg %p1636_p8 }
  0x24   : > { %p1644_p9 = pnand %p1643_p4, %p1637_p1 }
  0x26   : > { %1647 = shalt.err (!%p1644_p9)
}
  0x27   : > { %s1751_s4 = smov 512   ;;  %s1752_s5 = smov 32  }
  0x28   : > { %1528 = dma.hbm_to_vmem [thread:$0]  (!%p1826_p12), %s2219_s1, 8192, %s1819_s19, [#allocation8], %s1751_s4, %s1751_s4, %s1752_s5  }
  0x29   : > { %p24_p1 = scmp.eq.s32.totalorder %s23_s23, 0  ;;  %p33_p2 = scmp.ne.s32.totalorder %s1744_s11, %s1740_s10 }
  0x2a   : > { %p34_p4 = scmp.eq.s32.totalorder %s1748_s12, 0  ;;  %p1538_p6 = scmp.lt.s32.totalorder %s1748_s12, 2 }
  0x2b   : > { %s1865_s8 = scalar_select %p24_p1, %s1744_s11, %s26_s22  }
  0x2c   : > { %p35_p8 = por %p34_p4, %p33_p2  ;;  %p2228_p9 = scmp.eq.s32.totalorder %s1795_s13, 1 }
  0x2d   : > { %s123_s18 = sand.u32 1, %s1744_s11   ;;  %s1259_s20 = sshll.u32 %s1748_s12, 11 }
  0x2e   : > { %p1869_p11 = por %p2228_p9, %p33_p2  ;;  %s1229_s24 = sshll.u32 %s123_s18, 7 }
  0x2f   : > { %s1878_s27 = scalar_lea.hbm %s2218_s0, %s1259_s20  ;;  %s127_s19 = scalar_lea.vmem [#allocation4], %s1229_s24 }
  0x30   : > { %s135_s22 = sshll.u32 %s127_s19, 4  ;;  %p1880_p12 = pnand %p1538_p6, %p35_p8  ;;  %s1884_s22 = int_to_ptr.vmem [resolvable:$true] %s135_s22 }
  0x31   : > { %s1886_s28 = scalar_lea.sflag [#allocation5], %s123_s18  ;;  %s1648_s29 = scalar_lea.hbm %s1878_s27, 2048 }
  0x32   : > { %p1649_p13 = scmp.ne.s32.totalorder %s1878_s27, %s1648_s29  ;;  %p1650_p0 = pneg %p1880_p12 }
  0x33   : > { %s1653_s6 = scalar_lea.hbm %s2218_s0, 4096  ;;  %p1654_p7 = scmp.lt.u32.totalorder %s1878_s27, %s2218_s0 }
  0x34   : > { %p1651_p3 = pnand %p1650_p0, %p1649_p13  ;;  %p1655_p10 = scmp.lt.u32.totalorder %s1653_s6, %s1648_s29 }
  0x35   : > { %p1657_p2 = scmp.lt.u32.totalorder %s1648_s29, %s1878_s27 }
  0x36   : > { %p1652_p5 = pneg %p1651_p3  ;;  %p1656_p1 = por %p1655_p10, %p1654_p7 }
  0x38   : > { %p1658_p4 = por %p1657_p2, %p1656_p1 }
  0x3a   : > { %p1659_p6 = pnand %p1658_p4, %p1652_p5 }
  0x3c   : > { %1662 = shalt.err (!%p1659_p6)
}
  0x3d   : > { %s1663_s18 = scalar_lea.vmem %s1884_s22, 2048  ;;  %s1753_s24 = smov [#allocation4]  }
  0x3e   : > { %p1664_p8 = scmp.ne.s32.totalorder %s1884_s22, %s1663_s18  ;;  %s1668_s25 = sshll.u32 %s1753_s24, 4  ;;  %s1669_s25 = int_to_ptr.vmem [resolvable:$false] %s1668_s25 }
  0x3f   : > { %s1670_s26 = scalar_lea.vmem %s1669_s25, 4096  ;;  %p1671_p3 = scmp.lt.s32.totalorder %s1884_s22, %s1669_s25 }
  0x40   : > { %p1666_p9 = pnand %p1664_p8, %p1650_p0  ;;  %p1672_p7 = scmp.lt.s32.totalorder %s1670_s26, %s1663_s18 }
  0x42   : > { %p1667_p13 = pneg %p1666_p9  ;;  %p1673_p10 = por %p1672_p7, %p1671_p3 }
  0x44   : > { %p1674_p1 = pnand %p1673_p10, %p1667_p13 }
  0x46   : > { %1677 = shalt.err (!%p1674_p1)
}
  0x47   : > { %1532 = dma.hbm_to_vmem [thread:$0]  (!%p1880_p12), %s1878_s27, 2048, %s1884_s22, %s1886_s28, %s1751_s4, %s1751_s4, %s1752_s5  }
  0x48   : > { %p2231_p0 = scmp.ne.s32.totalorder %s2226_s17, 0 }
  0x49   : > { %s1920_s19 = sand.u32 (!%p2231_p0), 1, %s1740_s10   ;;  %p2232_p5 = scmp.ne.s32.totalorder (!%p2231_p0), %s2224_s15, 0 }
  0x4a   : > { %147 = sbr.rel (%p2231_p0) target bundleno = 1133 (0x46d), region = 28  ;;  %s1234_s29 = sshll.u32 (!%p2231_p0), %s1920_s19, 7 }
  0x4b   : > { %s150_s30 = scalar_lea.sflag (!%p2231_p0), [#allocation5], %s1920_s19  ;;  %s1924_s3 = scalar_lea.vmem (!%p2231_p0), [#allocation4], %s1234_s29 }
  0x51   : > { %1723 = dma.done.wait (%p2232_p5), %s150_s30, 2048  }
  0x52   : > { %1725 = vsyncadd (%p2232_p5), %s150_s30, 4294965248  ;;  %p2233_p12 = scmp.eq.s32.totalorder %s1795_s13, 0 }
  0x54   : > { %1727 = dma.done.wait (%p2233_p12), [#allocation8], 8192   ;;  %p2234_p2 = pmov %p2233_p12 }
  0x55   : > { %s1236_s17 = sshll.u32 %s1920_s19, 5  ;;  %p2235_p4 = scmp.ne.s32.totalorder %s1795_s13, 0 }
  0x56   : > { %1729 = vsyncadd (%p2234_p2), [#allocation8], 4294959104  ;;  %s1935_s4 = scalar_lea.vmem [#allocation9], %s1236_s17  ;;  %v1754_v0 = vmov (!%p2235_p4), 0.0  }
  0x57   : > { %183 = sbr.rel (%p2235_p4) target bundleno = 94 (0x5e), region = 40  ;;  %184 = vst [vmem:[#allocation2] sm:$0xff] (!%p2235_p4), %v1754_v0  ;;  %185 = vst [vmem:[#allocation3] sm:$0xff] (!%p2235_p4), %v1754_v0 }
  0x5e PF: > { %v193_v1 = vld [vmem:[#allocation7 + $0x8] sm:$0xff]  ;;  %v192_v3 = vld [vmem:[#allocation7] sm:$0xff]  ;;  %v1755_v8 = vmov 0.0   ;;  %v195_v11 = vld [vmem:[#allocation7 + $0x18] sm:$0xff]  ;;  %s1260_s15 = sshll.u32 %s1795_s13, 9  ;;  %s1142_s5 = sshll.u32 %s1935_s4, 4  ;;  %s2173_s5 = int_to_ptr.vmem [resolvable:$true] %s1142_s5 }
  0x5f   : > { %v197_v2 = vld [vmem:[#allocation7 + $0x28] sm:$0xff]  ;;  %v196_v5 = vld [vmem:[#allocation7 + $0x20] sm:$0xff]  ;;  %320 = vmatprep.mubr.f32.mxu0 %v1755_v8  ;;  %391 = vmatprep.mubr.f32.mxu1 %v1755_v8  ;;  %v199_v12 = vld [vmem:[#allocation7 + $0x38] sm:$0xff]  ;;  %s2171_s23 = scalar_lea.hbm %s2220_s2, %s1260_s15  ;;  %s1129_s28 = scalar_lea.sflag [#allocation6], %s1920_s19 }
  0x60   : > { %v1939_v4 = vpack.c.bf16 %v197_v2, %v193_v1  ;;  %v201_v6 = vld [vmem:[#allocation7 + $0x48] sm:$0xff]  ;;  %v1943_v9 = vpack.c.bf16 %v196_v5, %v192_v3  ;;  %v200_v13 = vld [vmem:[#allocation7 + $0x40] sm:$0xff]  ;;  %v1948_v14 = vpack.c.bf16 %v199_v12, %v195_v11  ;;  %v194_v16 = vld [vmem:[#allocation7 + $0x10] sm:$0xff]  ;;  %s1678_s6 = scalar_lea.vmem %s2173_s5, 512  ;;  %s1756_s13 = smov [#allocation9]  }
  0x61   : > { %v205_v7 = vld [vmem:[#allocation7 + $0x68] sm:$0xff]  ;;  %v204_v15 = vld [vmem:[#allocation7 + $0x60] sm:$0xff]  ;;  %v198_v17 = vld [vmem:[#allocation7 + $0x30] sm:$0xff]  ;;  %p1679_p6 = scmp.ne.s32.totalorder %s2173_s5, %s1678_s6  ;;  %s1682_s7 = sshll.u32 %s1756_s13, 4  ;;  %s1683_s7 = int_to_ptr.vmem [resolvable:$false] %s1682_s7 }
  0x62   : > { %v1945_v10 = vpack.c.bf16 %v205_v7, %v201_v6  ;;  %1262 = vmatprep.subr.bf16.mxu0 %v1939_v4  ;;  %v1951_v18 = vpack.c.bf16 %v204_v15, %v200_v13  ;;  %v1953_v19 = vpack.c.bf16 %v198_v17, %v194_v16  ;;  %v209_v20 = vld [vmem:[#allocation7 + $0x88] sm:$0xff]  ;;  %v203_v22 = vld [vmem:[#allocation7 + $0x58] sm:$0xff]  ;;  %1294 = vmatprep.subr.bf16.mxu1 %v1948_v14  ;;  %v208_v25 = vld [vmem:[#allocation7 + $0x80] sm:$0xff]  ;;  %s1684_s20 = scalar_lea.vmem %s1683_s7, 1024  ;;  %p1685_p13 = scmp.lt.s32.totalorder %s2173_s5, %s1683_s7 }
  0x63   : > { %1264 = vmatpush1.bf16.msra.mxu0 %v1943_v9  ;;  %v213_v21 = vld [vmem:[#allocation7 + $0xa8] sm:$0xff]  ;;  %v207_v24 = vld [vmem:[#allocation7 + $0x78] sm:$0xff]  ;;  %v212_v26 = vld [vmem:[#allocation7 + $0xa0] sm:$0xff]  ;;  %p1680_p8 = pnand %p1679_p6, %p1869_p11  ;;  %p1686_p3 = scmp.lt.s32.totalorder %s1684_s20, %s1678_s6 }
  0x64   : > { %1266 = vmatprep.subr.bf16.mxu0 %v1945_v10  ;;  %v1957_v23 = vpack.c.bf16 %v213_v21, %v209_v20  ;;  %1296 = vmatpush1.bf16.msra.mxu1 %v1953_v19  ;;  %v1960_v27 = vpack.c.bf16 %v207_v24, %v203_v22  ;;  %v202_v28 = vld [vmem:[#allocation7 + $0x50] sm:$0xff]  ;;  %v217_v30 = vld [vmem:[#allocation7 + $0xc8] sm:$0xff]  ;;  %v211_v33 = vld [vmem:[#allocation7 + $0x98] sm:$0xff]  ;;  %v1966_v35 = vpack.c.bf16 %v212_v26, %v208_v25 }
  0x65   : > { %v206_v29 = vld [vmem:[#allocation7 + $0x70] sm:$0xff]  ;;  %v221_v32 = vld [vmem:[#allocation7 + $0xe8] sm:$0xff]  ;;  %v215_v34 = vld [vmem:[#allocation7 + $0xb8] sm:$0xff]  ;;  %p1681_p9 = pneg %p1680_p8  ;;  %p1687_p7 = por %p1686_p3, %p1685_p13 }
  0x66   : > { %v1962_v31 = vpack.c.bf16 %v206_v29, %v202_v28  ;;  %1298 = vmatprep.subr.bf16.mxu1 %v1960_v27  ;;  %v1968_v36 = vpack.c.bf16 %v215_v34, %v211_v33  ;;  %v216_v37 = vld [vmem:[#allocation7 + $0xc0] sm:$0xff]  ;;  %v210_v38 = vld [vmem:[#allocation7 + $0x90] sm:$0xff]  ;;  %v1971_v39 = vpack.c.bf16 %v221_v32, %v217_v30  ;;  %v225_v42 = vld [vmem:[#allocation7 + $0x108] sm:$0xff] }
  0x67   : > { %1268 = vmatpush1.bf16.msra.mxu0 %v1951_v18  ;;  %v220_v40 = vld [vmem:[#allocation7 + $0xe0] sm:$0xff]  ;;  %v214_v41 = vld [vmem:[#allocation7 + $0xb0] sm:$0xff]  ;;  %v229_v44 = vld [vmem:[#allocation7 + $0x128] sm:$0xff]  ;;  %p1688_p10 = pnand %p1687_p7, %p1681_p9 }
  0x68   : > { %1270 = vmatprep.subr.bf16.mxu0 %v1957_v23  ;;  %1300 = vmatpush1.bf16.msra.mxu1 %v1962_v31  ;;  %v1974_v43 = vpack.c.bf16 %v214_v41, %v210_v38  ;;  %v219_v45 = vld [vmem:[#allocation7 + $0xd8] sm:$0xff]  ;;  %v218_v48 = vld [vmem:[#allocation7 + $0xd0] sm:$0xff]  ;;  %v1980_v50 = vpack.c.bf16 %v220_v40, %v216_v37  ;;  %v1983_v52 = vpack.c.bf16 %v229_v44, %v225_v42  ;;  %v224_v53 = vld [vmem:[#allocation7 + $0x100] sm:$0xff] }
  0x69   : > { %v223_v46 = vld [vmem:[#allocation7 + $0xf8] sm:$0xff]  ;;  %1302 = vmatprep.subr.bf16.mxu1 %v1968_v36  ;;  %v222_v49 = vld [vmem:[#allocation7 + $0xf0] sm:$0xff]  ;;  %v228_v54 = vld [vmem:[#allocation7 + $0x120] sm:$0xff] }
  0x6a   : > { %v1977_v47 = vpack.c.bf16 %v223_v46, %v219_v45  ;;  %v227_v51 = vld [vmem:[#allocation7 + $0x118] sm:$0xff]  ;;  %v1986_v56 = vpack.c.bf16 %v222_v49, %v218_v48  ;;  %v233_v57 = vld [vmem:[#allocation7 + $0x148] sm:$0xff]  ;;  %v226_v60 = vld [vmem:[#allocation7 + $0x110] sm:$0xff]  ;;  %v1992_v62 = vpack.c.bf16 %v228_v54, %v224_v53 }
  0x6b   : > { %1272 = vmatpush1.bf16.msra.mxu0 %v1966_v35  ;;  %v231_v55 = vld [vmem:[#allocation7 + $0x138] sm:$0xff]  ;;  %v237_v58 = vld [vmem:[#allocation7 + $0x168] sm:$0xff]  ;;  %v230_v61 = vld [vmem:[#allocation7 + $0x130] sm:$0xff] }
  0x6c   : > { %1274 = vmatprep.subr.bf16.mxu0 %v1971_v39  ;;  %1304 = vmatpush1.bf16.msra.mxu1 %v1974_v43  ;;  %v1989_v59 = vpack.c.bf16 %v231_v55, %v227_v51  ;;  %v235_v63 = vld [vmem:[#allocation7 + $0x158] sm:$0xff]  ;;  %v1995_v1 = vpack.c.bf16 %v237_v58, %v233_v57  ;;  %v232_v2 = vld [vmem:[#allocation7 + $0x140] sm:$0xff]  ;;  %v1998_v5 = vpack.c.bf16 %v230_v61, %v226_v60  ;;  %v241_v6 = vld [vmem:[#allocation7 + $0x188] sm:$0xff] }
  0x6d   : > { %1306 = vmatprep.subr.bf16.mxu1 %v1977_v47  ;;  %v239_v0 = vld [vmem:[#allocation7 + $0x178] sm:$0xff]  ;;  %v236_v3 = vld [vmem:[#allocation7 + $0x160] sm:$0xff]  ;;  %v245_v7 = vld [vmem:[#allocation7 + $0x1a8] sm:$0xff] }
  0x6e   : > { %v2001_v11 = vpack.c.bf16 %v239_v0, %v235_v63  ;;  %v234_v12 = vld [vmem:[#allocation7 + $0x150] sm:$0xff]  ;;  %v2004_v15 = vpack.c.bf16 %v236_v3, %v232_v2  ;;  %v243_v16 = vld [vmem:[#allocation7 + $0x198] sm:$0xff]  ;;  %v2007_v20 = vpack.c.bf16 %v245_v7, %v241_v6  ;;  %v240_v21 = vld [vmem:[#allocation7 + $0x180] sm:$0xff] }
  0x6f   : > { %1276 = vmatpush1.bf16.msra.mxu0 %v1980_v50  ;;  %v238_v13 = vld [vmem:[#allocation7 + $0x170] sm:$0xff]  ;;  %v247_v17 = vld [vmem:[#allocation7 + $0x1b8] sm:$0xff]  ;;  %v244_v22 = vld [vmem:[#allocation7 + $0x1a0] sm:$0xff] }
  0x70   : > { %1278 = vmatprep.subr.bf16.mxu0 %v1983_v52  ;;  %1308 = vmatpush1.bf16.msra.mxu1 %v1986_v56  ;;  %v2010_v24 = vpack.c.bf16 %v238_v13, %v234_v12  ;;  %v249_v25 = vld [vmem:[#allocation7 + $0x1c8] sm:$0xff]  ;;  %v2013_v28 = vpack.c.bf16 %v247_v17, %v243_v16  ;;  %v242_v29 = vld [vmem:[#allocation7 + $0x190] sm:$0xff]  ;;  %v2016_v32 = vpack.c.bf16 %v244_v22, %v240_v21  ;;  %v251_v33 = vld [vmem:[#allocation7 + $0x1d8] sm:$0xff] }
  0x71   : > { %1310 = vmatprep.subr.bf16.mxu1 %v1989_v59  ;;  %v253_v26 = vld [vmem:[#allocation7 + $0x1e8] sm:$0xff]  ;;  %v246_v30 = vld [vmem:[#allocation7 + $0x1b0] sm:$0xff]  ;;  %v255_v34 = vld [vmem:[#allocation7 + $0x1f8] sm:$0xff] }
  0x72   : > { %v2019_v37 = vpack.c.bf16 %v253_v26, %v249_v25  ;;  %v248_v38 = vld [vmem:[#allocation7 + $0x1c0] sm:$0xff]  ;;  %v2022_v41 = vpack.c.bf16 %v246_v30, %v242_v29  ;;  %v2025_v42 = vpack.c.bf16 %v255_v34, %v251_v33  ;;  %v250_v44 = vld [vmem:[#allocation7 + $0x1d0] sm:$0xff]  ;;  %v189_v53 = vld [vmem:[%s1924_s3 + $0x8] sm:$0xff] }
  0x73   : > { %1280 = vmatpush1.bf16.msra.mxu0 %v1992_v62  ;;  %v252_v40 = vld [vmem:[#allocation7 + $0x1e0] sm:$0xff]  ;;  %v254_v45 = vld [vmem:[#allocation7 + $0x1f0] sm:$0xff]  ;;  %v191_v2 = vld [vmem:[%s1924_s3 + $0x18] sm:$0xff] }
  0x74   : > { %1282 = vmatprep.subr.bf16.mxu0 %v1995_v1  ;;  %1312 = vmatpush1.bf16.msra.mxu1 %v1998_v5  ;;  %v2028_v46 = vpack.c.bf16 %v252_v40, %v248_v38  ;;  %v2032_v48 = vpack.c.bf16 %v254_v45, %v250_v44  ;;  %v186_v49 = vld [vmem:[#allocation2] sm:$0xff]  ;;  %v188_v51 = vld [vmem:[%s1924_s3] sm:$0xff]  ;;  %v187_v21 = vld [vmem:[#allocation3] sm:$0xff] }
  0x75   : > { %1314 = vmatprep.subr.bf16.mxu1 %v2001_v11  ;;  %v190_v55 = vld [vmem:[%s1924_s3 + $0x10] sm:$0xff]  ;;  %v1238_v44 = vld [vmem:[%s1924_s3 + $0x20] sm:$0xff]  ;;  %v1239_v45 = vld [vmem:[%s1924_s3 + $0x28] sm:$0xff] }
  0x77   : > { %1284 = vmatpush1.bf16.msra.mxu0 %v2004_v15 }
  0x78   : > { %1286 = vmatprep.subr.bf16.mxu0 %v2007_v20  ;;  %1316 = vmatpush1.bf16.msra.mxu1 %v2010_v24 }
  0x79   : > { %1318 = vmatprep.subr.bf16.mxu1 %v2013_v28 }
  0x7b   : > { %1288 = vmatpush1.bf16.msra.mxu0 %v2016_v32 }
  0x7c   : > { %1290 = vmatprep.subr.bf16.mxu0 %v2019_v37  ;;  %1320 = vmatpush1.bf16.msra.mxu1 %v2022_v41 }
  0x7d   : > { %1322 = vmatprep.subr.bf16.mxu1 %v2025_v42 }
  0x7f   : > { %1292 = vmatpush1.bf16.msra.mxu0 %v2028_v46 }
  0x80   : > { %1326 = vmatprep.subr.bf16.mxu0 %v1939_v4  ;;  %1324 = vmatpush1.bf16.msra.mxu1 %v2032_v48 }
  0x81   : > { %1358 = vmatprep.subr.bf16.mxu1 %v1948_v14 }
  0x82   : > { %321 = vmatmul.mubr.f32.vlgmr.msra.gmra.mrb[0].mxu0 %v186_v49 }
  0x83   : > { %1328 = vmatpush1.bf16.msra.mxu0 %v1943_v9  ;;  %555 = vmatprep.mubr.f32.mxu0 %v1755_v8 }
  0x84   : > { %392 = vmatmul.mubr.f32.vlgmr.msra.gmra.mrb[0].mxu1 %v186_v49  ;;  %1330 = vmatprep.subr.bf16.mxu0 %v1945_v10 }
  0x85   : > { %1360 = vmatpush1.bf16.msra.mxu1 %v1953_v19  ;;  %626 = vmatprep.mubr.f32.mxu1 %v1755_v8 }
  0x86   : > { %1362 = vmatprep.subr.bf16.mxu1 %v1960_v27 }
  0x87   : > { %1332 = vmatpush1.bf16.msra.mxu0 %v1951_v18 }
  0x88   : > { %1334 = vmatprep.subr.bf16.mxu0 %v1957_v23 }
  0x89   : > { %1364 = vmatpush1.bf16.msra.mxu1 %v1962_v31 }
  0x8a   : > { %1366 = vmatprep.subr.bf16.mxu1 %v1968_v36 }
  0x8b   : > { %1336 = vmatpush1.bf16.msra.mxu0 %v1966_v35 }
  0x8c   : > { %1338 = vmatprep.subr.bf16.mxu0 %v1971_v39 }
  0x8d   : > { %1368 = vmatpush1.bf16.msra.mxu1 %v1974_v43 }
  0x8e   : > { %1370 = vmatprep.subr.bf16.mxu1 %v1977_v47 }
  0x8f   : > { %1340 = vmatpush1.bf16.msra.mxu0 %v1980_v50 }
  0x90   : > { %1342 = vmatprep.subr.bf16.mxu0 %v1983_v52 }
  0x91   : > { %1372 = vmatpush1.bf16.msra.mxu1 %v1986_v56 }
  0x92   : > { %1374 = vmatprep.subr.bf16.mxu1 %v1989_v59 }
  0x93   : > { %1344 = vmatpush1.bf16.msra.mxu0 %v1992_v62 }
  0x94   : > { %1346 = vmatprep.subr.bf16.mxu0 %v1995_v1 }
  0x95   : > { %1376 = vmatpush1.bf16.msra.mxu1 %v1998_v5 }
  0x96   : > { %1378 = vmatprep.subr.bf16.mxu1 %v2001_v11 }
  0x97   : > { %1348 = vmatpush1.bf16.msra.mxu0 %v2004_v15 }
  0x98   : > { %1350 = vmatprep.subr.bf16.mxu0 %v2007_v20 }
  0x99   : > { %1380 = vmatpush1.bf16.msra.mxu1 %v2010_v24 }
  0x9a   : > { %1382 = vmatprep.subr.bf16.mxu1 %v2013_v28 }
  0x9b   : > { %1352 = vmatpush1.bf16.msra.mxu0 %v2016_v32 }
  0x9c   : > { %1354 = vmatprep.subr.bf16.mxu0 %v2019_v37 }
  0x9d   : > { %1384 = vmatpush1.bf16.msra.mxu1 %v2022_v41 }
  0x9e   : > { %1386 = vmatprep.subr.bf16.mxu1 %v2025_v42 }
  0x9f   : > { %1356 = vmatpush1.bf16.msra.mxu0 %v2028_v46 }
  0xa0   : > { %1390 = vmatprep.subr.bf16.mxu0 %v1939_v4 }
  0xa1   : > { %1388 = vmatpush1.bf16.msra.mxu1 %v2032_v48 }
  0xa2   : > { %1422 = vmatprep.subr.bf16.mxu1 %v1948_v14 }
 0x155   : > { %v322_v54 = vpop.f32.mrb[0].mxu0 }
 0x156   : > { %v398_v57 = vadd.f32 %v322_v54, %v188_v51  ;;  %v324_v58 = vpop.f32.mrb[1].mxu0  ;;  %v1240_v51 = vld [vmem:[%s1924_s3 + $0x30] sm:$0xff] }
 0x157   : > { %v399_v60 = vadd.f32 %v324_v58, %v189_v53  ;;  %v393_v61 = vpop.f32.mrb[0].mxu1 }
 0x158   : > { %1580 = vtanh.f32 %v398_v57  ;;  %v400_v63 = vadd.f32 %v393_v61, %v190_v55  ;;  %v395_v0 = vpop.f32.mrb[1].mxu1  ;;  %v1241_v61 = vld [vmem:[%s1924_s3 + $0x38] sm:$0xff] }
 0x159   : > { %1582 = vtanh.f32 %v399_v60  ;;  %v401_v3 = vadd.f32 %v395_v0, %v191_v2 }
 0x15a   : > { %1584 = vtanh.f32 %v400_v63 }
 0x15b   : > { %1586 = vtanh.f32 %v401_v3 }
 0x162   : > { %v1581_v6 = vpop.eup %1580 }
 0x163   : > { %v1583_v7 = vpop.eup %1582  ;;  %v403_v12 = vmul.f32 0.5, %v1581_v6 }
 0x164   : > { %v1585_v13 = vpop.eup %1584  ;;  %v406_v16 = vmul.f32 0.5, %v1583_v7 }
 0x165   : > { %v404_v17 = vadd.f32 0.5, %v403_v12  ;;  %v1587_v30 = vpop.eup %1586 }
 0x166   : > { %v407_v22 = vadd.f32 0.5, %v406_v16  ;;  %v410_v33 = vmul.f32 0.5, %v1587_v30 }
 0x167   : > { %v413_v25 = vmul.f32 %v1585_v13, %v404_v17 }
 0x168   : > { %v412_v26 = vmul.f32 %v407_v22, %v187_v21  ;;  %v411_v34 = vadd.f32 0.5, %v410_v33 }
 0x16a   : > { %v2077_v29 = vadd.f32 %v413_v25, %v412_v26 }
 0x16c   : > { %1588 = vtanh.f32 %v2077_v29 }
 0x176   : > { %v1589_v38 = vpop.eup %1588 }
 0x177   : > { %v416_v40 = vmul.f32 %v1589_v38, %v411_v34 }
 0x179   : > { %419 = vst [vmem:[%s1935_s4] sm:$0xff] %v416_v40  ;;  %556 = vmatmul.mubr.f32.vlgmr.msra.gmra.mrb[2].mxu0 %v416_v40  ;;  %627 = vmatmul.mubr.f32.vlgmr.msra.gmra.mrb[2].mxu1 %v416_v40 }
 0x17a   : > { %1392 = vmatpush1.bf16.msra.mxu0 %v1943_v9  ;;  %1424 = vmatpush1.bf16.msra.mxu1 %v1953_v19 }
 0x17b   : > { %1394 = vmatprep.subr.bf16.mxu0 %v1945_v10  ;;  %1426 = vmatprep.subr.bf16.mxu1 %v1960_v27 }
 0x17c   : > { %791 = vmatprep.mubr.f32.mxu0 %v1755_v8  ;;  %862 = vmatprep.mubr.f32.mxu1 %v1755_v8 }
 0x17e   : > { %1396 = vmatpush1.bf16.msra.mxu0 %v1951_v18  ;;  %1428 = vmatpush1.bf16.msra.mxu1 %v1962_v31 }
 0x17f   : > { %1398 = vmatprep.subr.bf16.mxu0 %v1957_v23  ;;  %1430 = vmatprep.subr.bf16.mxu1 %v1968_v36 }
 0x182   : > { %1400 = vmatpush1.bf16.msra.mxu0 %v1966_v35  ;;  %1432 = vmatpush1.bf16.msra.mxu1 %v1974_v43 }
 0x183   : > { %1402 = vmatprep.subr.bf16.mxu0 %v1971_v39  ;;  %1434 = vmatprep.subr.bf16.mxu1 %v1977_v47 }
 0x186   : > { %1404 = vmatpush1.bf16.msra.mxu0 %v1980_v50  ;;  %1436 = vmatpush1.bf16.msra.mxu1 %v1986_v56 }
 0x187   : > { %1406 = vmatprep.subr.bf16.mxu0 %v1983_v52  ;;  %1438 = vmatprep.subr.bf16.mxu1 %v1989_v59 }
 0x18a   : > { %1408 = vmatpush1.bf16.msra.mxu0 %v1992_v62  ;;  %1440 = vmatpush1.bf16.msra.mxu1 %v1998_v5 }
 0x18b   : > { %1410 = vmatprep.subr.bf16.mxu0 %v1995_v1  ;;  %1442 = vmatprep.subr.bf16.mxu1 %v2001_v11 }
 0x18e   : > { %1412 = vmatpush1.bf16.msra.mxu0 %v2004_v15  ;;  %1444 = vmatpush1.bf16.msra.mxu1 %v2010_v24 }
 0x18f   : > { %1414 = vmatprep.subr.bf16.mxu0 %v2007_v20  ;;  %1446 = vmatprep.subr.bf16.mxu1 %v2013_v28 }
 0x192   : > { %1416 = vmatpush1.bf16.msra.mxu0 %v2016_v32  ;;  %1448 = vmatpush1.bf16.msra.mxu1 %v2022_v41 }
 0x193   : > { %1418 = vmatprep.subr.bf16.mxu0 %v2019_v37  ;;  %1450 = vmatprep.subr.bf16.mxu1 %v2025_v42 }
 0x196   : > { %1420 = vmatpush1.bf16.msra.mxu0 %v2028_v46  ;;  %1452 = vmatpush1.bf16.msra.mxu1 %v2032_v48 }
 0x197   : > { %1454 = vmatprep.subr.bf16.mxu0 %v1939_v4  ;;  %1486 = vmatprep.subr.bf16.mxu1 %v1948_v14 }
 0x24c   : > { %v557_v49 = vpop.f32.mrb[2].mxu0  ;;  %v628_v53 = vpop.f32.mrb[2].mxu1 }
 0x24d   : > { %v633_v54 = vadd.f32 %v1238_v44, %v557_v49  ;;  %v559_v55 = vpop.f32.mrb[3].mxu0  ;;  %v630_v57 = vpop.f32.mrb[3].mxu1  ;;  %v635_v60 = vadd.f32 %v1240_v51, %v628_v53  ;;  %v1251_v44 = vld [vmem:[%s1924_s3 + $0x78] sm:$0xff] }
 0x24e   : > { %v634_v58 = vadd.f32 %v1239_v45, %v559_v55  ;;  %v636_v63 = vadd.f32 %v1241_v61, %v630_v57 }
 0x24f   : > { %1590 = vtanh.f32 %v633_v54 }
 0x250   : > { %1592 = vtanh.f32 %v634_v58 }
 0x251   : > { %1594 = vtanh.f32 %v635_v60 }
 0x252   : > { %1596 = vtanh.f32 %v636_v63 }
 0x259   : > { %v1591_v0 = vpop.eup %1590 }
 0x25a   : > { %v638_v2 = vmul.f32 0.5, %v1591_v0  ;;  %v1593_v4 = vpop.eup %1592 }
 0x25b   : > { %v641_v3 = vmul.f32 0.5, %v1593_v4  ;;  %v1595_v6 = vpop.eup %1594 }
 0x25c   : > { %v639_v14 = vadd.f32 0.5, %v638_v2  ;;  %v1597_v17 = vpop.eup %1596 }
 0x25d   : > { %v642_v7 = vadd.f32 0.5, %v641_v3  ;;  %v645_v21 = vmul.f32 0.5, %v1597_v17 }
 0x25e   : > { %v648_v12 = vmul.f32 %v1595_v6, %v639_v14 }
 0x25f   : > { %v647_v13 = vmul.f32 %v642_v7, %v2077_v29  ;;  %v646_v22 = vadd.f32 0.5, %v645_v21 }
 0x261   : > { %v2120_v16 = vadd.f32 %v648_v12, %v647_v13 }
 0x263   : > { %1598 = vtanh.f32 %v2120_v16 }
 0x26d   : > { %v1599_v25 = vpop.eup %1598 }
 0x26e   : > { %v651_v26 = vmul.f32 %v1599_v25, %v646_v22 }
 0x270   : > { %1242 = vst [vmem:[%s1935_s4 + $0x8] sm:$0xff] %v651_v26  ;;  %792 = vmatmul.mubr.f32.vlgmr.msra.gmra.mrb[4].mxu0 %v651_v26  ;;  %863 = vmatmul.mubr.f32.vlgmr.msra.gmra.mrb[4].mxu1 %v651_v26 }
 0x271   : > { %1456 = vmatpush1.bf16.msra.mxu0 %v1943_v9  ;;  %1488 = vmatpush1.bf16.msra.mxu1 %v1953_v19  ;;  %v1244_v9 = vld [vmem:[%s1924_s3 + $0x48] sm:$0xff] }
 0x272   : > { %1458 = vmatprep.subr.bf16.mxu0 %v1945_v10  ;;  %1490 = vmatprep.subr.bf16.mxu1 %v1960_v27 }
 0x273   : > { %1027 = vmatprep.mubr.f32.mxu0 %v1755_v8  ;;  %1098 = vmatprep.mubr.f32.mxu1 %v1755_v8  ;;  %v1243_v8 = vld [vmem:[%s1924_s3 + $0x40] sm:$0xff] }
 0x275   : > { %1460 = vmatpush1.bf16.msra.mxu0 %v1951_v18  ;;  %1492 = vmatpush1.bf16.msra.mxu1 %v1962_v31  ;;  %v1245_v18 = vld [vmem:[%s1924_s3 + $0x50] sm:$0xff] }
 0x276   : > { %1462 = vmatprep.subr.bf16.mxu0 %v1957_v23  ;;  %1494 = vmatprep.subr.bf16.mxu1 %v1968_v36 }
 0x279   : > { %1464 = vmatpush1.bf16.msra.mxu0 %v1966_v35  ;;  %1496 = vmatpush1.bf16.msra.mxu1 %v1974_v43 }
 0x27a   : > { %1466 = vmatprep.subr.bf16.mxu0 %v1971_v39  ;;  %1498 = vmatprep.subr.bf16.mxu1 %v1977_v47  ;;  %v1246_v39 = vld [vmem:[%s1924_s3 + $0x58] sm:$0xff] }
 0x27d   : > { %1468 = vmatpush1.bf16.msra.mxu0 %v1980_v50  ;;  %1500 = vmatpush1.bf16.msra.mxu1 %v1986_v56 }
 0x27e   : > { %1470 = vmatprep.subr.bf16.mxu0 %v1983_v52  ;;  %1502 = vmatprep.subr.bf16.mxu1 %v1989_v59 }
 0x281   : > { %1472 = vmatpush1.bf16.msra.mxu0 %v1992_v62  ;;  %1504 = vmatpush1.bf16.msra.mxu1 %v1998_v5 }
 0x282   : > { %1474 = vmatprep.subr.bf16.mxu0 %v1995_v1  ;;  %1506 = vmatprep.subr.bf16.mxu1 %v2001_v11 }
 0x285   : > { %1476 = vmatpush1.bf16.msra.mxu0 %v2004_v15  ;;  %1508 = vmatpush1.bf16.msra.mxu1 %v2010_v24 }
 0x286   : > { %1478 = vmatprep.subr.bf16.mxu0 %v2007_v20  ;;  %1510 = vmatprep.subr.bf16.mxu1 %v2013_v28 }
 0x289   : > { %1480 = vmatpush1.bf16.msra.mxu0 %v2016_v32  ;;  %1512 = vmatpush1.bf16.msra.mxu1 %v2022_v41  ;;  %v1248_v41 = vld [vmem:[%s1924_s3 + $0x60] sm:$0xff] }
 0x28a   : > { %1482 = vmatprep.subr.bf16.mxu0 %v2019_v37  ;;  %1514 = vmatprep.subr.bf16.mxu1 %v2025_v42  ;;  %v1249_v42 = vld [vmem:[%s1924_s3 + $0x68] sm:$0xff] }
 0x28d   : > { %1484 = vmatpush1.bf16.msra.mxu0 %v2028_v46  ;;  %1516 = vmatpush1.bf16.msra.mxu1 %v2032_v48  ;;  %v1250_v48 = vld [vmem:[%s1924_s3 + $0x70] sm:$0xff] }
 0x343   : > { %v793_v10 = vpop.f32.mrb[4].mxu0  ;;  %v864_v19 = vpop.f32.mrb[4].mxu1 }
 0x344   : > { %v869_v23 = vadd.f32 %v1243_v8, %v793_v10  ;;  %v795_v27 = vpop.f32.mrb[5].mxu0  ;;  %v866_v31 = vpop.f32.mrb[5].mxu1  ;;  %v871_v36 = vadd.f32 %v1245_v18, %v864_v19 }
 0x345   : > { %v870_v35 = vadd.f32 %v1244_v9, %v795_v27  ;;  %v872_v43 = vadd.f32 %v1246_v39, %v866_v31 }
 0x346   : > { %1600 = vtanh.f32 %v869_v23 }
 0x347   : > { %1602 = vtanh.f32 %v870_v35 }
 0x348   : > { %1604 = vtanh.f32 %v871_v36 }
 0x349   : > { %1606 = vtanh.f32 %v872_v43 }
 0x350   : > { %v1601_v47 = vpop.eup %1600 }
 0x351   : > { %v874_v50 = vmul.f32 0.5, %v1601_v47  ;;  %v1603_v52 = vpop.eup %1602 }
 0x352   : > { %v877_v59 = vmul.f32 0.5, %v1603_v52  ;;  %v1605_v62 = vpop.eup %1604 }
 0x353   : > { %v875_v56 = vadd.f32 0.5, %v874_v50  ;;  %v1607_v20 = vpop.eup %1606 }
 0x354   : > { %v878_v1 = vadd.f32 0.5, %v877_v59  ;;  %v881_v24 = vmul.f32 0.5, %v1607_v20 }
 0x355   : > { %v884_v5 = vmul.f32 %v1605_v62, %v875_v56 }
 0x356   : > { %v883_v11 = vmul.f32 %v878_v1, %v2120_v16  ;;  %v882_v28 = vadd.f32 0.5, %v881_v24 }
 0x358   : > { %v885_v15 = vadd.f32 %v884_v5, %v883_v11 }
 0x35a   : > { %1608 = vtanh.f32 %v885_v15 }
 0x364   : > { %v1609_v32 = vpop.eup %1608 }
 0x365   : > { %v887_v37 = vmul.f32 %v1609_v32, %v882_v28 }
 0x367   : > { %1247 = vst [vmem:[%s1935_s4 + $0x10] sm:$0xff] %v887_v37  ;;  %1028 = vmatmul.mubr.f32.vlgmr.msra.gmra.mrb[6].mxu0 %v887_v37  ;;  %1099 = vmatmul.mubr.f32.vlgmr.msra.gmra.mrb[6].mxu1 %v887_v37 }
 0x43a   : > { %v1029_v46 = vpop.f32.mrb[6].mxu0  ;;  %v1100_v29 = vpop.f32.mrb[6].mxu1 }
 0x43b   : > { %v1105_v30 = vadd.f32 %v1248_v41, %v1029_v46  ;;  %v1031_v33 = vpop.f32.mrb[7].mxu0  ;;  %v1102_v34 = vpop.f32.mrb[7].mxu1  ;;  %v1107_v40 = vadd.f32 %v1250_v48, %v1100_v29 }
 0x43c   : > { %v1106_v38 = vadd.f32 %v1249_v42, %v1031_v33  ;;  %v1108_v45 = vadd.f32 %v1251_v44, %v1102_v34 }
 0x43d   : > { %1610 = vtanh.f32 %v1105_v30 }
 0x43e   : > { %1612 = vtanh.f32 %v1106_v38 }
 0x43f   : > { %1614 = vtanh.f32 %v1107_v40 }
 0x440   : > { %1616 = vtanh.f32 %v1108_v45 }
 0x447   : > { %v1611_v49 = vpop.eup %1610 }
 0x448   : > { %v1110_v51 = vmul.f32 0.5, %v1611_v49  ;;  %v1613_v53 = vpop.eup %1612 }
 0x449   : > { %v1113_v55 = vmul.f32 0.5, %v1613_v53  ;;  %v1615_v57 = vpop.eup %1614 }
 0x44a   : > { %v1111_v54 = vadd.f32 0.5, %v1110_v51  ;;  %v1617_v0 = vpop.eup %1616 }
 0x44b   : > { %v1114_v58 = vadd.f32 0.5, %v1113_v55  ;;  %v1117_v2 = vmul.f32 0.5, %v1617_v0 }
 0x44c   : > { %v1120_v60 = vmul.f32 %v1615_v57, %v1111_v54 }
 0x44d   : > { %v1119_v61 = vmul.f32 %v1114_v58, %v885_v15  ;;  %v1118_v4 = vadd.f32 0.5, %v1117_v2 }
 0x44f   : > { %v1121_v63 = vadd.f32 %v1120_v60, %v1119_v61 }
 0x451   : > { %1618 = vtanh.f32 %v1121_v63  ;;  %1124 = vst [vmem:[#allocation3] sm:$0xff] %v1121_v63 }
 0x45b   : > { %v1619_v14 = vpop.eup %1618 }
 0x45c   : > { %v1123_v3 = vmul.f32 %v1619_v14, %v1118_v4 }
 0x45e   : > { %1125 = vst [vmem:[#allocation2] sm:$0xff] %v1123_v3  ;;  %1252 = vst [vmem:[%s1935_s4 + $0x18] sm:$0xff] %v1123_v3 }
 0x45f   : > { %1691 = shalt.err (!%p1688_p10)
}
 0x460   : > { %s1692_s18 = scalar_lea.hbm %s2171_s23, 512  ;;  %s1696_s26 = scalar_lea.hbm %s2220_s2, 1024 }
 0x461   : > { %p1693_p1 = scmp.ne.s32.totalorder %s2171_s23, %s1692_s18  ;;  %p1697_p12 = scmp.lt.u32.totalorder %s2171_s23, %s2220_s2 }
 0x462   : > { %p1698_p2 = scmp.lt.u32.totalorder %s1696_s26, %s1692_s18  ;;  %p1700_p6 = scmp.lt.u32.totalorder %s1692_s18, %s2171_s23 }
 0x463   : > { %p1694_p0 = pnand %p1693_p1, %p1869_p11 }
 0x464   : > { %p1699_p4 = por %p1698_p2, %p1697_p12 }
 0x465   : > { %p1695_p5 = pneg %p1694_p0 }
 0x466   : > { %p1701_p8 = por %p1700_p6, %p1699_p4 }
 0x468   : > { %p1702_p9 = pnand %p1701_p8, %p1695_p5 }
 0x46a   : > { %1705 = shalt.err (!%p1702_p9)
}
 0x46b   : > { %s1757_s3 = smov 128   ;;  %s1758_s17 = smov 8  }
 0x46c   : > { %1523 = dma.vmem_to_hbm [thread:$0]  (%p1869_p11), %s2173_s5, 512, %s2171_s23, %s1129_s28, %s1757_s3, %s1757_s3, %s1758_s17  }
 0x46d PF: > { %s1157_s4 = sand.u32 1, %s1736_s9   ;;  %p2236_p13 = scmp.ne.s32.totalorder %s2225_s16, 0 }
 0x46e   : > { %p2237_p3 = scmp.ge.s32.totalorder %s1748_s12, 2  ;;  %s1158_s15 = scalar_lea.sflag [#allocation6], %s1157_s4 }
 0x470   : > { %p1534_p7 = pnand %p2237_p3, %p2236_p13 }
 0x472   : > { %1731 = dma.done.wait (!%p1534_p7), %s1158_s15, 512  }
 0x473   : > { %1733 = vsyncadd (!%p1534_p7), %s1158_s15, 4294966784  ;;  %p16_p10 = scmp.ge.s32.totalorder %s1831_s21, 4   ;;  %s2238_s9 = smov %s1740_s10 }
 0x474   : > { %s2239_s10 = smov %s1744_s11  ;;  %s2240_s11 = smov %s1865_s8 }
 0x475   : > { %s2241_s12 = smov %s1831_s21  ;;  %18 = sbr.rel (!%p16_p10) target bundleno = 6 (0x6), region = 87 }
 0x47c   :  { %1163 = vsyncpa [#allocation5], 1 }
 0x47d   :  { %1165 = vsyncpa [#allocation5 + $0x1], 1 }
 0x47e   :  { %1166 = vsyncpa [#allocation8], 1 }
 0x47f   :  { %1167 = vsyncpa [#allocation6], 1 }
 0x480   :  { %1169 = vsyncpa [#allocation6 + $0x1], 1 }

</bundles_post_ra>
